<compile_context>
chip_gen: v6e
topology: v6e:2x2x1
jax: 0.10.0
libtpu: 0.0.40
codegen_flags: <defaults>
</compile_context>

<pallas_src>
import jax
import jax.numpy as jnp
from jax.experimental import pallas as pl
from jax.experimental.pallas import tpu as pltpu


def _round_up(a: int, b: int) -> int:
    return (a + b - 1) // b * b


def _projection_kernel(x_ref, w_ref, b_ref, o_ref, m_ref, l_ref):
    # x_ref : (TM, d_model)   token tile (fetched once per M tile)
    # w_ref : (d_model, TV)   weight vocab tile (bf16 by default)
    # b_ref : (1, TV)         bias vocab tile (f32)
    # o_ref : (TM, TV)        log-probabilities
    # m_ref : (TM, 1) f32     running row max        (scratch)
    # l_ref : (TM, 1) f32     running sum of exp     (scratch)
    phase = pl.program_id(1)
    j = pl.program_id(2)

    # MXU matmul in the weight dtype (bf16 path) with f32 accumulation.
    logits = jnp.dot(x_ref[...].astype(w_ref.dtype), w_ref[...],
                     preferred_element_type=jnp.float32)
    logits = logits + b_ref[...].astype(jnp.float32)

    @pl.when(jnp.logical_and(phase == 0, j == 0))
    def _init():
        m_ref[...] = jnp.full_like(m_ref[...], -jnp.inf)
        l_ref[...] = jnp.zeros_like(l_ref[...])

    @pl.when(phase == 0)
    def _stats():
        m_prev = m_ref[...]
        m_new = jnp.maximum(m_prev, jnp.max(logits, axis=-1, keepdims=True))
        # TODO(synk): bf16 exp on v6e/v7x EUP (~2x transcendental throughput);
        # kept f32 for accuracy and v5e compatibility.
        l_ref[...] = (jnp.exp(m_prev - m_new) * l_ref[...]
                      + jnp.sum(jnp.exp(logits - m_new), axis=-1, keepdims=True))
        m_ref[...] = m_new

    @pl.when(phase == 1)
    def _write():
        norm = m_ref[...] + jnp.log(l_ref[...])          # per-row logsumexp
        o_ref[...] = (logits - norm).astype(o_ref.dtype)


def projection_layer(x, w, b, *, tm=256, tv=2048, out_dtype=None):
    """log_softmax(x @ w + b, axis=-1).

    x: (batch, seq, d_model); w: (d_model, vocab) (transposed vs torch, bf16 or
    f32); b: (1, vocab) f32.  Returns (batch, seq, vocab) in out_dtype
    (defaults to x.dtype; pass jnp.bfloat16 to halve the output HBM write).
    """
    batch, seq, d_model = x.shape
    vocab = w.shape[1]
    out_dtype = jnp.dtype(out_dtype or x.dtype)
    m = batch * seq
    x2d = x.reshape(m, d_model)

    # ---- tile selection --------------------------------------------------
    tv = min(_round_up(tv, 128), _round_up(vocab, 128))   # lane-dense vocab tile
    tm = min(_round_up(tm, 8), _round_up(m, 8))           # sublane-aligned tokens

    try:
        vmem_phys = int(pltpu.get_tpu_info().vmem_capacity_bytes)
    except Exception:                      # conservative fallback (v7x size)
        vmem_phys = 64 << 20
    budget = vmem_phys // 2                # working-set target with headroom

    def footprint(tm_, tv_):
        return (2 * tm_ * d_model * x.dtype.itemsize      # x tile (double buf)
                + 2 * d_model * tv_ * w.dtype.itemsize    # W tile
                + 2 * tv_ * b.dtype.itemsize              # bias tile
                + 2 * tm_ * tv_ * out_dtype.itemsize      # output tile
                + 2 * tm_ * tv_ * 4                       # f32 logits/exp temps
                + 4 * tm_ * 4)                            # m/l scratch

    while footprint(tm, tv) > budget and (tv > 128 or tm > 8):
        if tv > 128:
            tv = max(128, tv // 2)
        else:
            tm = max(8, tm // 2)

    m_pad = _round_up(m, tm)
    v_pad = _round_up(vocab, tv)

    # TODO(synk): mask the ragged last M tile in-kernel instead of padding.
    if m_pad != m:
        x2d = jnp.pad(x2d, ((0, m_pad - m), (0, 0)))
    if v_pad != vocab:
        # Padded vocab columns get a very negative bias -> exp() == 0 in the
        # normalizer; they are sliced off afterwards.
        w = jnp.pad(w, ((0, 0), (0, v_pad - vocab)))
        b = jnp.pad(b, ((0, 0), (0, v_pad - vocab)), constant_values=-1e30)

    ni, nj = m_pad // tm, v_pad // tv
    grid = (ni, 2, nj)                     # (token tiles, phase, vocab tiles)

    vmem_limit = int(min(max(int(footprint(tm, tv) * 1.25) + (2 << 20), 16 << 20),
                         vmem_phys - (4 << 20)))

    cost = pl.CostEstimate(
        flops=2 * 2 * m_pad * d_model * v_pad,           # matmul in both passes
        transcendentals=m_pad * v_pad,                   # one exp per logit
        bytes_accessed=int(m_pad * d_model * x.dtype.itemsize
                           + 2 * ni * d_model * v_pad * w.dtype.itemsize
                           + 2 * ni * v_pad * b.dtype.itemsize
                           + m_pad * v_pad * out_dtype.itemsize),
    )

    out2d = pl.pallas_call(
        _projection_kernel,
        out_shape=jax.ShapeDtypeStruct((m_pad, v_pad), out_dtype),
        grid_spec=pltpu.PrefetchScalarGridSpec(
            num_scalar_prefetch=0,
            grid=grid,
            in_specs=[
                # Token tile: constant across (phase, vocab) -> one fetch per i.
                pl.BlockSpec((tm, d_model), lambda i, p, j: (i, 0)),
                # Weight / bias vocab tiles march over j (re-streamed per phase).
                pl.BlockSpec((d_model, tv), lambda i, p, j: (0, j)),
                pl.BlockSpec((1, tv), lambda i, p, j: (0, j)),
            ],
            # Stats phase pins the output block to (i, 0) (never written there),
            # write phase visits (i, j): each output block hits HBM exactly once.
            out_specs=pl.BlockSpec((tm, tv), lambda i, p, j: (i, p * j)),
            scratch_shapes=[
                pltpu.VMEM((tm, 1), jnp.float32),   # running row max
                pltpu.VMEM((tm, 1), jnp.float32),   # running sum-exp
            ],
        ),
        compiler_params=pltpu.CompilerParams(
            dimension_semantics=("parallel", "arbitrary", "arbitrary"),
            vmem_limit_bytes=vmem_limit,
        ),
        cost_estimate=cost,
    )(x2d, w, b)

    if m_pad != m or v_pad != vocab:
        out2d = out2d[:m, :vocab]
    return out2d.reshape(batch, seq, vocab)


def init_params(key, d_model, vocab_size, w_dtype=jnp.bfloat16):
    """nn.Linear-style uniform init; W stored as (d_model, vocab), bf16 default."""
    kw, kb = jax.random.split(key)
    lim = 1.0 / (d_model ** 0.5)
    w = jax.random.uniform(kw, (d_model, vocab_size), jnp.float32, -lim, lim)
    b = jax.random.uniform(kb, (1, vocab_size), jnp.float32, -lim, lim)
    return w.astype(w_dtype), b


if __name__ == "__main__":
    batch, seq, d_model, vocab_size = 2, 8, 64, 128
    key = jax.random.PRNGKey(0)
    kx, kp = jax.random.split(key)

    x = jax.random.normal(kx, (batch, seq, d_model), jnp.float32)
    w, b = init_params(kp, d_model, vocab_size)   # bf16 weight, f32 bias

    out = projection_layer(x, w, b)
    out = jax.block_until_ready(out)

    # Pure-JAX f32 reference.
    logits_ref = x.reshape(-1, d_model) @ w.astype(jnp.float32) + b
    ref = jax.nn.log_softmax(logits_ref, axis=-1).reshape(batch, seq, vocab_size)

    assert out.shape == (batch, seq, vocab_size)
    err = float(jnp.max(jnp.abs(out.astype(jnp.float32) - ref)))
    assert jnp.allclose(out.astype(jnp.float32), ref, atol=2e-2, rtol=2e-2), err

    print("KERNEL_OK")
</pallas_src>

<mosaic_0001>
module attributes {stable_mosaic.version = 11 : i64} {
  func.func @_projection_kernel(%arg0: i32, %arg1: i32, %arg2: i32, %arg3: memref<16x64xf32, #tpu.memory_space<vmem>>, %arg4: memref<64x128xbf16, #tpu.memory_space<vmem>>, %arg5: memref<1x128xf32, #tpu.memory_space<vmem>>, %arg6: memref<16x128xf32, #tpu.memory_space<vmem>>, %arg7: memref<16x1xf32, #tpu.memory_space<vmem>>, %arg8: memref<16x1xf32, #tpu.memory_space<vmem>>) attributes {dimension_semantics = [#tpu.dimension_semantics<parallel>, #tpu.dimension_semantics<arbitrary>, #tpu.dimension_semantics<arbitrary>], iteration_bounds = array<i64: 1, 2, 1>, scalar_prefetch = 0 : i64, scratch_operands = 2 : i64, tpu.core_type = #tpu.core_type<tc>, window_params = [{transform_indices = @transform_0, window_bounds = array<i64: 16, 64>}, {transform_indices = @transform_1, window_bounds = array<i64: 64, 128>}, {transform_indices = @transform_2, window_bounds = array<i64: 1, 128>}, {transform_indices = @transform_3, window_bounds = array<i64: 16, 128>}]} {
    %c0 = arith.constant 0 : index
    %c0_0 = arith.constant 0 : index
    %0 = vector.load %arg3[%c0, %c0_0] : memref<16x64xf32, #tpu.memory_space<vmem>>, vector<16x64xf32>
    %1 = arith.truncf %0 : vector<16x64xf32> to vector<16x64xbf16>
    %c0_1 = arith.constant 0 : index
    %c0_2 = arith.constant 0 : index
    %2 = vector.load %arg4[%c0_1, %c0_2] : memref<64x128xbf16, #tpu.memory_space<vmem>>, vector<64x128xbf16>
    %cst = arith.constant dense<0.000000e+00> : vector<16x128xf32>
    %3 = tpu.matmul %1, %2, %cst {dimension_numbers = #tpu.dot_dimension_numbers<[1], [0], [0], [1], [0, 0, 1, 1], [], []>} : vector<16x64xbf16>, vector<64x128xbf16>, vector<16x128xf32> -> vector<16x128xf32>
    %c0_3 = arith.constant 0 : index
    %c0_4 = arith.constant 0 : index
    %4 = vector.load %arg5[%c0_3, %c0_4] : memref<1x128xf32, #tpu.memory_space<vmem>>, vector<1x128xf32>
    %5 = vector.broadcast %4 : vector<1x128xf32> to vector<16x128xf32>
    %6 = arith.addf %3, %5 : vector<16x128xf32>
    %c0_i32 = arith.constant 0 : i32
    %7 = arith.cmpi eq, %arg1, %c0_i32 : i32
    %c0_i32_5 = arith.constant 0 : i32
    %8 = arith.cmpi eq, %arg2, %c0_i32_5 : i32
    %9 = arith.andi %7, %8 : i1
    %10 = arith.extui %9 : i1 to i32
    %c0_i32_6 = arith.constant 0 : i32
    %11 = arith.cmpi ne, %10, %c0_i32_6 : i32
    scf.if %11 {
      %cst_10 = arith.constant 0xFF800000 : f32
      %18 = vector.broadcast %cst_10 : f32 to vector<16x1xf32>
      %c0_11 = arith.constant 0 : index
      %c0_12 = arith.constant 0 : index
      %19 = vector.load %arg7[%c0_11, %c0_12] : memref<16x1xf32, #tpu.memory_space<vmem>>, vector<16x1xf32>
      tpu.vector_store %arg7[%c0_11, %c0_12], %18 {strides = array<i32>} : memref<16x1xf32, #tpu.memory_space<vmem>>, vector<16x1xf32>,
      %cst_13 = arith.constant 0.000000e+00 : f32
      %20 = vector.broadcast %cst_13 : f32 to vector<16x1xf32>
      %c0_14 = arith.constant 0 : index
      %c0_15 = arith.constant 0 : index
      %21 = vector.load %arg8[%c0_14, %c0_15] : memref<16x1xf32, #tpu.memory_space<vmem>>, vector<16x1xf32>
      tpu.vector_store %arg8[%c0_14, %c0_15], %20 {strides = array<i32>} : memref<16x1xf32, #tpu.memory_space<vmem>>, vector<16x1xf32>,
    } else {
    }
    %c0_i32_7 = arith.constant 0 : i32
    %12 = arith.cmpi eq, %arg1, %c0_i32_7 : i32
    %13 = arith.extui %12 : i1 to i32
    %c0_i32_8 = arith.constant 0 : i32
    %14 = arith.cmpi ne, %13, %c0_i32_8 : i32
    scf.if %14 {
      %c0_10 = arith.constant 0 : index
      %c0_11 = arith.constant 0 : index
      %18 = vector.load %arg7[%c0_10, %c0_11] : memref<16x1xf32, #tpu.memory_space<vmem>>, vector<16x1xf32>
      %cst_12 = arith.constant dense<0xFF800000> : vector<16xf32>
      %19 = vector.multi_reduction <maximumf>, %6, %cst_12 [1] : vector<16x128xf32> to vector<16xf32>
      %20 = vector.shape_cast %19 : vector<16xf32> to vector<16x1xf32>
      %21 = arith.maximumf %18, %20 : vector<16x1xf32>
      %22 = arith.subf %18, %21 : vector<16x1xf32>
      %23 = math.exp %22 : vector<16x1xf32>
      %c0_13 = arith.constant 0 : index
      %c0_14 = arith.constant 0 : index
      %24 = vector.load %arg8[%c0_13, %c0_14] : memref<16x1xf32, #tpu.memory_space<vmem>>, vector<16x1xf32>
      %25 = arith.mulf %23, %24 : vector<16x1xf32>
      %26 = vector.broadcast %21 : vector<16x1xf32> to vector<16x128xf32>
      %27 = arith.subf %6, %26 : vector<16x128xf32>
      %28 = math.exp %27 : vector<16x128xf32>
      %cst_15 = arith.constant dense<0.000000e+00> : vector<16xf32>
      %29 = vector.multi_reduction <add>, %28, %cst_15 [1] : vector<16x128xf32> to vector<16xf32>
      %30 = vector.shape_cast %29 : vector<16xf32> to vector<16x1xf32>
      %31 = arith.addf %25, %30 : vector<16x1xf32>
      %c0_16 = arith.constant 0 : index
      %c0_17 = arith.constant 0 : index
      %32 = vector.load %arg8[%c0_16, %c0_17] : memref<16x1xf32, #tpu.memory_space<vmem>>, vector<16x1xf32>
      tpu.vector_store %arg8[%c0_16, %c0_17], %31 {strides = array<i32>} : memref<16x1xf32, #tpu.memory_space<vmem>>, vector<16x1xf32>,
      %c0_18 = arith.constant 0 : index
      %c0_19 = arith.constant 0 : index
      %33 = vector.load %arg7[%c0_18, %c0_19] : memref<16x1xf32, #tpu.memory_space<vmem>>, vector<16x1xf32>
      tpu.vector_store %arg7[%c0_18, %c0_19], %21 {strides = array<i32>} : memref<16x1xf32, #tpu.memory_space<vmem>>, vector<16x1xf32>,
    } else {
    }
    %c1_i32 = arith.constant 1 : i32
    %15 = arith.cmpi eq, %arg1, %c1_i32 : i32
    %16 = arith.extui %15 : i1 to i32
    %c0_i32_9 = arith.constant 0 : i32
    %17 = arith.cmpi ne, %16, %c0_i32_9 : i32
    scf.if %17 {
      %c0_10 = arith.constant 0 : index
      %c0_11 = arith.constant 0 : index
      %18 = vector.load %arg7[%c0_10, %c0_11] : memref<16x1xf32, #tpu.memory_space<vmem>>, vector<16x1xf32>
      %c0_12 = arith.constant 0 : index
      %c0_13 = arith.constant 0 : index
      %19 = vector.load %arg8[%c0_12, %c0_13] : memref<16x1xf32, #tpu.memory_space<vmem>>, vector<16x1xf32>
      %20 = math.log %19 : vector<16x1xf32>
      %21 = arith.addf %18, %20 : vector<16x1xf32>
      %22 = vector.broadcast %21 : vector<16x1xf32> to vector<16x128xf32>
      %23 = arith.subf %6, %22 : vector<16x128xf32>
      %c0_14 = arith.constant 0 : index
      %c0_15 = arith.constant 0 : index
      %24 = vector.load %arg6[%c0_14, %c0_15] : memref<16x128xf32, #tpu.memory_space<vmem>>, vector<16x128xf32>
      tpu.vector_store %arg6[%c0_14, %c0_15], %23 {strides = array<i32>} : memref<16x128xf32, #tpu.memory_space<vmem>>, vector<16x128xf32>,
    } else {
    }
    return
  }
  func.func @transform_0(%arg0: i32, %arg1: i32, %arg2: i32) -> (i32, i32) {
    %c0_i32 = arith.constant 0 : i32
    %c0_i32_0 = arith.constant 0 : i32
    return %arg0, %c0_i32 : i32, i32
  }
  func.func @transform_1(%arg0: i32, %arg1: i32, %arg2: i32) -> (i32, i32) {
    %c0_i32 = arith.constant 0 : i32
    %c0_i32_0 = arith.constant 0 : i32
    return %c0_i32, %arg2 : i32, i32
  }
  func.func @transform_2(%arg0: i32, %arg1: i32, %arg2: i32) -> (i32, i32) {
    %c0_i32 = arith.constant 0 : i32
    %c0_i32_0 = arith.constant 0 : i32
    return %c0_i32, %arg2 : i32, i32
  }
  func.func @transform_3(%arg0: i32, %arg1: i32, %arg2: i32) -> (i32, i32) {
    %0 = arith.muli %arg1, %arg2 : i32
    %c0_i32 = arith.constant 0 : i32
    return %arg0, %0 : i32, i32
  }
}

</mosaic_0001>

<bundles_post_ra>
// kernel: tpu_custom_call.1
= control target key start
LH: loop header
LB: loop body
LE: loop exit
PB: predicated region body
PF: predicated region fallthrough
CT: control target
= control target key end

     0   :  { %8 = vsyncpa [#allocation5], 0  ;;  %s914_s0 = inlined_call_operand.hbm [shape: f32[16,64], index: 0, kind: input, shape index: {}]   ;;  %s915_s1 = inlined_call_operand.hbm [shape: bf16[64,128], index: 1, kind: input, shape index: {}]   ;;  %s916_s2 = inlined_call_operand.vmem [shape: f32[1,128], index: 2, kind: input, shape index: {}]   ;;  %s917_s3 = inlined_call_operand.hbm [shape: f32[16,128], index: 3, kind: output, shape index: {}]  }
   0x1   :  { %9 = vsyncpa [#allocation8], 0 }
   0x2   :  { %10 = vsyncpa [#allocation6], 0 }
   0x3   :  { %12 = vsyncpa [#allocation6 + $0x1], 0  ;;  %s801_s12 = smov 0   ;;  %s803_s13 = smov 0  }
   0x4   :  { %s805_s14 = smov 0  }
   0x5 LB: > { %s526_s15 = sadd.s32 4294967295, %s764_s14   ;;  %s527_s16 = sadd.s32 4294967294, %s764_s14   ;;  %s764_s14 = sphi %s805_s14, %s18_s14   ;;  %s760_s13 = sphi %s803_s13, %s923_s13   ;;  %s756_s12 = sphi %s801_s12, %s922_s12  }
   0x6   : > { %s33_s17 = sadd.s32 1, %s760_s13  ;;  %p528_p0 = scmp.ge.s32.totalorder %s764_s14, 1 }
   0x7   : > { %p35_p1 = scmp.ge.s32.totalorder %s33_s17, 2  ;;  %p150_p2 = scmp.lt.s32.totalorder %s764_s14, 3 }
   0x8   : > { %p823_p3 = scmp.eq.s32.totalorder %s526_s15, 0  ;;  %s766_s20 = smov [#allocation4]  }
   0x9   : > { %s925_s17 = smov (%p35_p1, %s33_s17), 0  ;;  %p829_p4 = pnand %p528_p0, %p150_p2 }
   0xa   : > { %s165_s21 = sshll.u32 %s766_s20, 4  ;;  %s767_s23 = smov [#allocation7]   ;;  %s166_s21 = int_to_ptr.vmem [resolvable:$true] %s165_s21 }
   0xb   : > { %p578_p5 = pneg %p829_p4  ;;  %s180_s24 = sshll.u32 %s767_s23, 4  ;;  %s181_s24 = int_to_ptr.vmem [resolvable:$true] %s180_s24 }
   0xc   : > { %s665_s25 = scalar_lea.vmem %s166_s21, 256  ;;  %p673_p11 = scmp.lt.s32.totalorder %s166_s21, %s166_s21 }
   0xd   : > { %p837_p6 = pnand %p823_p3, %p578_p5  ;;  %p666_p8 = scmp.ne.s32.totalorder %s166_s21, %s665_s25 }
   0xe   : > { %p674_p12 = scmp.lt.s32.totalorder %s665_s25, %s665_s25 }
   0xf   : > { %p656_p7 = pneg %p837_p6 }
  0x10   : > { %p675_p13 = por %p674_p12, %p673_p11 }
  0x11   : > { %p668_p9 = pnand %p666_p8, %p656_p7 }
  0x13   : > { %p669_p10 = pneg %p668_p9 }
  0x15   : > { %p676_p0 = pnand %p675_p13, %p669_p10 }
  0x17   : > { %679 = shalt.err (!%p676_p0)
}
  0x18   : > { %s768_s26 = smov 128   ;;  %s769_s27 = smov 8  }
  0x19   : > { %581 = dma.hbm_to_vmem [thread:$0]  (!%p837_p6), %s914_s0, 256, %s166_s21, [#allocation5], %s768_s26, %s768_s26, %s769_s27  }
  0x1a   : > { %s691_s30 = scalar_lea.vmem %s181_s24, 512  ;;  %p699_p8 = scmp.lt.s32.totalorder %s181_s24, %s181_s24 }
  0x1b   : > { %p692_p1 = scmp.ne.s32.totalorder %s181_s24, %s691_s30  ;;  %p700_p9 = scmp.lt.s32.totalorder %s691_s30, %s691_s30 }
  0x1d   : > { %p694_p2 = pnand %p692_p1, %p656_p7  ;;  %p701_p11 = por %p700_p9, %p699_p8 }
  0x1f   : > { %p695_p5 = pneg %p694_p2 }
  0x21   : > { %p702_p10 = pnand %p701_p11, %p695_p5 }
  0x23   : > { %705 = shalt.err (!%p702_p10)
}
  0x24   : > { %s770_s4 = smov 64   ;;  %s771_s5 = smov 4  }
  0x25   : > { %584 = dma.hbm_to_vmem [thread:$0]  (!%p837_p6), %s915_s1, 512, %s181_s24, [#allocation8], %s770_s4, %s770_s4, %s771_s5  }
  0x26   : > { %202 = sbr.rel (%p829_p4) target bundleno = 867 (0x363), region = 32 }
  0x2b   : > { %743 = dma.done.wait (%p823_p3), [#allocation5], 256  }
  0x2c   : > { %745 = vsyncadd (%p823_p3), [#allocation5], 4294967040 }
  0x2d   : > { %747 = dma.done.wait (%p823_p3), [#allocation8], 512  }
  0x2e   : > { %749 = vsyncadd (%p823_p3), [#allocation8], 4294966784  ;;  %v772_v0 = vmov 0.0   ;;  %vm773_vm0 = vmmov 0   ;;  %v635_v1 = vld [vmem:[#allocation7 + $0x18] sm:$0xff]   ;;  %v636_v2 = vld [vmem:[#allocation7 + $0x10] sm:$0xff]  }
  0x2f   : > { %554 = vmatprep.subr.bf16.mxu0 %v772_v0  ;;  %562 = vmatprep.mubr.msk.bf16.mxu0 %vm773_vm0, %v772_v0  ;;  %v637_v3 = vld [vmem:[#allocation7 + $0x8] sm:$0xff]   ;;  %v638_v4 = vld [vmem:[#allocation7] sm:$0xff]   ;;  %v235_v5 = vld [vmem:[#allocation4] sm:$0xff]  ;;  %vm277_vm1 = vcmask 523264   ;;  %p322_p3 = scmp.eq.s32.totalorder %s756_s12, 0 }
  0x30   : > { %555 = vmatpush3.bf16.msra.mxu0 %v635_v1  ;;  %v236_v6 = vld [vmem:[#allocation4 + $0x8] sm:$0xff]  ;;  %v535_v8 = vld [vmem:[%s916_s2] ss:$0 sm:$0xff]  ;;  %vm328_vm2 = vcmask (%p322_p3), 7168   ;;  %v774_v15 = vmov (%p322_p3), -inf   ;;  %v775_v16 = vmov (%p322_p3), 0.0  }
  0x31   : > { %556 = vmatprep.subr.bf16.mxu0 %v772_v0  ;;  %v237_v7 = vpack.c.bf16 %v236_v6, %v235_v5  ;;  %329 = vst.msk [vmem:[#allocation2] sm:$0xff] (%p322_p3), %vm328_vm2, %v774_v15  ;;  %330 = vst.msk [vmem:[#allocation2 + $0x8] sm:$0xff] (%p322_p3), %vm328_vm2, %v774_v15 }
  0x32   : > { %331 = vst.msk [vmem:[#allocation3] sm:$0xff] (%p322_p3), %vm328_vm2, %v775_v16  ;;  %332 = vst.msk [vmem:[#allocation3 + $0x8] sm:$0xff] (%p322_p3), %vm328_vm2, %v775_v16 }
  0x34   : > { %557 = vmatpush3.bf16.msra.mxu0 %v636_v2 }
  0x35   : > { %558 = vmatprep.subr.bf16.mxu0 %v772_v0 }
  0x38   : > { %559 = vmatpush3.bf16.msra.mxu0 %v637_v3 }
  0x39   : > { %560 = vmatprep.subr.bf16.mxu0 %v772_v0 }
  0x3c   : > { %561 = vmatpush3.bf16.msra.mxu0 %v638_v4 }
  0x3f   : > { %563 = vmatmul.mubr.msk.bf16.vlgmr.msra.gmra.mxu0 %vm277_vm1, %v237_v7 }
  0xff   : > { %v315_v9 = vpop.f32.mrf.mxu0 }
 0x100   : > { %v873_v10 = vadd.f32 %v535_v8, %v315_v9 }
 0x101   : > { %v564_v11 = vpop.f32.mrf.mxu0  ;;  %327 = sbr.rel (!%p322_p3) target bundleno = 262 (0x106), region = 44 }
 0x103   : > { %v318_v12 = vpop.f32.mrf.mxu0 }
 0x104   : > { %v875_v13 = vadd.f32 %v535_v8, %v318_v12 }
 0x105   : > { %v565_v14 = vpop.f32.mrf.mxu0 }
 0x106 PF: > { %p542_p4 = scmp.ne.s32.totalorder %s756_s12, 0 }
 0x108   : > { %335 = sbr.rel (%p542_p4) target bundleno = 696 (0x2b8), region = 48 }
 0x10d   : > { %338 = vmax.xlane.f32.xlu0 %v873_v10  ;;  %v776_v17 = vmov 0   ;;  %v336_v18 = vld [vmem:[#allocation2] sm:$0xff]  ;;  %vm376_vm3 = vcmask 7168   ;;  %v337_v21 = vld [vmem:[#allocation2 + $0x8] sm:$0xff]  ;;  %v350_v37 = vld [vmem:[#allocation3] sm:$0xff] }
 0x10e   : > { %639 = vset.pattern.permute.xlu1 %v776_v17  ;;  %640 = vset.pattern.permute.xlu0 %v776_v17  ;;  %v351_v41 = vld [vmem:[#allocation3 + $0x8] sm:$0xff] }
 0x111   : > { %340 = vmax.xlane.f32.xlu0 %v875_v13 }
 0x196   : > { %v339_v19 = vpop.xlane.xlu0 %338 }
 0x197   : > { %v342_v20 = vmax.f32 %v336_v18, %v339_v19 }
 0x199   : > { %v344_v22 = vsub.f32 %v336_v18, %v342_v20  ;;  %379 = vst.msk [vmem:[#allocation2] sm:$0xff] %vm376_vm3, %v342_v20  ;;  %356 = vperm.xlu1 %639, %v342_v20  }
 0x19a   : > { %v341_v23 = vpop.xlane.xlu0 %340 }
 0x19b   : > { %v343_v24 = vmax.f32 %v337_v21, %v341_v23  ;;  %v346_v34 = vmul.f32 1.442695, %v344_v22 }
 0x19d   : > { %v345_v25 = vsub.f32 %v337_v21, %v343_v24  ;;  %380 = vst.msk [vmem:[#allocation2 + $0x8] sm:$0xff] %vm376_vm3, %v343_v24  ;;  %361 = vperm.xlu1 %639, %v343_v24  }
 0x19f   : > { %v348_v35 = vmul.f32 1.442695, %v345_v25 }
 0x214   : > { %v357_v26 = vpop.permute.xlu1 %356 }
 0x215   : > { %v364_v27 = vsub.f32 %v873_v10, %v357_v26 }
 0x217   : > { %v366_v28 = vmul.f32 1.442695, %v364_v27 }
 0x218   : > { %v362_v29 = vpop.permute.xlu1 %361 }
 0x219   : > { %641 = vpow2.f32 %v366_v28  ;;  %v365_v30 = vsub.f32 %v875_v13, %v362_v29 }
 0x21b   : > { %v368_v31 = vmul.f32 1.442695, %v365_v30 }
 0x21d   : > { %643 = vpow2.f32 %v368_v31 }
 0x21e   : > { %645 = vpow2.f32 %v346_v34 }
 0x21f   : > { %647 = vpow2.f32 %v348_v35 }
 0x226   : > { %v642_v32 = vpop.eup %641 }
 0x227   : > { %370 = vadd.xlane.f32.xlu0 %v642_v32 }
 0x22a   : > { %v644_v33 = vpop.eup %643 }
 0x22b   : > { %372 = vadd.xlane.f32.xlu1 %v644_v33  ;;  %v646_v36 = vpop.eup %645 }
 0x22c   : > { %v352_v38 = vmul.f32 %v646_v36, %v350_v37  ;;  %v648_v39 = vpop.eup %647 }
 0x22d   : > { %v353_v43 = vmul.f32 %v648_v39, %v351_v41 }
 0x2b0   : > { %v371_v40 = vpop.xlane.xlu0 %370 }
 0x2b1   : > { %v374_v42 = vadd.f32 %v371_v40, %v352_v38 }
 0x2b3   : > { %377 = vst.msk [vmem:[#allocation3] sm:$0xff] %vm376_vm3, %v374_v42 }
 0x2b4   : > { %v373_v44 = vpop.xlane.xlu1 %372 }
 0x2b5   : > { %v375_v45 = vadd.f32 %v373_v44, %v353_v43 }
 0x2b7   : > { %378 = vst.msk [vmem:[#allocation3 + $0x8] sm:$0xff] %vm376_vm3, %v375_v45 }
 0x2b8 PF: > { %p543_p6 = scmp.ne.s32.totalorder %s756_s12, 1 }
 0x2ba   : > { %384 = sbr.rel (%p543_p6) target bundleno = 853 (0x355), region = 52 }
 0x2bf   : > { %v387_v46 = vld [vmem:[#allocation3] sm:$0xff]  ;;  %v777_v47 = vmov 0   ;;  %v388_v48 = vld [vmem:[#allocation3 + $0x8] sm:$0xff]  ;;  %v385_v50 = vld [vmem:[#allocation2] sm:$0xff] }
 0x2c0   : > { %649 = vset.pattern.permute.xlu0 %v777_v47  ;;  %650 = vlog2.f32 %v387_v46  ;;  %v386_v53 = vld [vmem:[#allocation2 + $0x8] sm:$0xff] }
 0x2c1   : > { %652 = vlog2.f32 %v388_v48 }
 0x2cd   : > { %v651_v49 = vpop.eup %650 }
 0x2ce   : > { %v653_v51 = vpop.eup %652  ;;  %v390_v52 = vmul.f32 0.6931472, %v651_v49 }
 0x2cf   : > { %v392_v54 = vmul.f32 0.6931472, %v653_v51 }
 0x2d0   : > { %v393_v55 = vadd.f32 %v390_v52, %v385_v50 }
 0x2d1   : > { %v394_v56 = vadd.f32 %v392_v54, %v386_v53 }
 0x2d2   : > { %397 = vperm.xlu0 %649, %v393_v55  }
 0x2d6   : > { %402 = vperm.xlu0 %649, %v394_v56  }
 0x34d   : > { %v398_v57 = vpop.permute.xlu0 %397 }
 0x34e   : > { %v405_v58 = vsub.f32 %v873_v10, %v398_v57 }
 0x350   : > { %407 = vst [vmem:[#allocation9] sm:$0xff] %v405_v58 }
 0x351   : > { %v403_v59 = vpop.permute.xlu0 %402 }
 0x352   : > { %v406_v60 = vsub.f32 %v875_v13, %v403_v59 }
 0x354   : > { %408 = vst [vmem:[#allocation9 + $0x8] sm:$0xff] %v406_v60 }
 0x355 PF: > { %p891_p7 = scmp.eq.s32.totalorder %s526_s15, 1  ;;  %s778_s11 = smov [#allocation9]  }
 0x356   : > { %s425_s12 = sshll.u32 %s778_s11, 4  ;;  %s426_s12 = int_to_ptr.vmem [resolvable:$true] %s425_s12 }
 0x357   : > { %s706_s18 = scalar_lea.vmem %s426_s12, 256  ;;  %s712_s19 = scalar_lea.vmem %s426_s12, 512 }
 0x358   : > { %p707_p12 = scmp.ne.s32.totalorder %s426_s12, %s706_s18  ;;  %p713_p1 = scmp.lt.s32.totalorder %s426_s12, %s426_s12 }
 0x359   : > { %p714_p2 = scmp.lt.s32.totalorder %s712_s19, %s706_s18 }
 0x35a   : > { %p708_p13 = pnand %p707_p12, %p891_p7 }
 0x35b   : > { %p715_p5 = por %p714_p2, %p713_p1 }
 0x35c   : > { %p709_p0 = pneg %p708_p13 }
 0x35e   : > { %p716_p8 = pnand %p715_p5, %p709_p0 }
 0x360   : > { %719 = shalt.err (!%p716_p8)
}
 0x361   : > { %s779_s20 = smov 128   ;;  %s780_s15 = smov 8  }
 0x362   : > { %575 = dma.vmem_to_hbm [thread:$0]  (%p891_p7), %s426_s12, 256, %s917_s3, [#allocation6], %s779_s20, %s779_s20, %s780_s15  }
 0x363 PF: > { %p594_p9 = scmp.ge.s32.totalorder %s764_s14, 2  ;;  %p595_p11 = scmp.eq.s32.totalorder %s527_s16, 1 }
 0x365   : > { %p586_p10 = pnand %p595_p11, %p594_p9 }
 0x367   : > { %p587_p3 = pneg %p586_p10 }
 0x369   : > { %751 = dma.done.wait (%p587_p3), [#allocation6], 256  }
 0x36a   : > { %753 = vsyncadd (%p587_p3), [#allocation6], 4294967040  ;;  %s18_s14 = sadd.s32 1, %s764_s14   ;;  %s922_s12 = smov %s760_s13 }
 0x36b   : > { %p15_p4 = scmp.ge.s32.totalorder %s18_s14, 4   ;;  %s923_s13 = smov %s925_s17 }
 0x36d   :  { %17 = sbr.rel (!%p15_p4) target bundleno = 5 (0x5), region = 90 }
 0x372   :  { %446 = vsyncpa [#allocation5], 1 }
 0x373   :  { %448 = vsyncpa [#allocation5 + $0x1], 1 }
 0x374   :  { %449 = vsyncpa [#allocation8], 1 }
 0x375   :  { %450 = vsyncpa [#allocation6], 1 }
 0x376   :  { %452 = vsyncpa [#allocation6 + $0x1], 1 }

</bundles_post_ra>
